<compile_context>
chip_gen: v5e
topology: v5e:2x2
jax: 0.10.0
libtpu: 0.0.40
codegen_flags: <defaults>
</compile_context>

<pallas_src>
import jax
import jax.numpy as jnp
from jax.experimental import pallas as pl
from jax.experimental.pallas import tpu as pltpu

EPS = 1e-6
LANE = 128
SUBLANE = 8


def _round_up(n, m):
    return ((n + m - 1) // m) * m


def _make_kernel(d_true, d_pad, bt, s_pad, e0, e1):
    """Fused message-passing kernel for one (bt, s_pad, d_pad) batch block."""
    needs_mask = d_true < d_pad

    def kernel(x_ref, idx0_ref, f0_ref, idx1_ref, f1_ref,
               w0_ref, w1_ref, p_ref, out_ref):
        x = x_ref[...]                      # (bt, Sp, Dp) f32 (padded lanes are 0)
        p = p_ref[...]                      # (8, Dp) f32 packed params
        g0, be0, b0 = p[0:1], p[1:2], p[2:3]
        g1, be1, b1 = p[3:4], p[4:5], p[5:6]

        if needs_mask:
            lane_mask = jax.lax.broadcasted_iota(jnp.int32, (1, 1, d_pad), 2) < d_true
        else:
            lane_mask = None

        def layernorm(v, g, b):
            # annotated-transformer LayerNorm: unbiased std (ddof=1), eps on std.
            mean = jnp.sum(v, axis=-1, keepdims=True) * (1.0 / d_true)
            c = v - mean
            if lane_mask is not None:
                c = jnp.where(lane_mask, c, 0.0)        # keep padded lanes at 0
            var = jnp.sum(c * c, axis=-1, keepdims=True) * (1.0 / (d_true - 1))
            inv = pl.reciprocal(jnp.sqrt(var) + EPS, approx=True)   # EUP, not VALU
            return g * c * inv + b

        def node_matmul(v, w_ref):
            # Flatten (bt, Sp, Dp) -> (bt*Sp, Dp) so the MXU sees M = bt*Sp rows.
            v2 = v.reshape(bt * s_pad, d_pad).astype(jnp.bfloat16)
            r = jnp.dot(v2, w_ref[...], preferred_element_type=jnp.float32)
            return r.reshape(bt, s_pad, d_pad)

        def gather_sum(idx_ref, f_ref, e):
            # Build the (bt, Sp, e) one-hot scatter matrix in-kernel (VPU) from the
            # int32 edge->node index map; padded slots are -1 and never match.
            node = jax.lax.broadcasted_iota(jnp.int32, (bt, s_pad, e), 1)
            adj = (node == idx_ref[...]).astype(jnp.bfloat16)
            return jnp.einsum('bse,bed->bsd', adj, f_ref[...],
                              preferred_element_type=jnp.float32)

        # ---- sublayer 0: bond + angle message passing, (folded) linear, residual ----
        # Linear0(bond_mess(xn0)) = xn0 @ (Wbm @ W0^T) + A0 @ (f0 @ W0^T) + b0
        xn0 = layernorm(x, g0, be0)
        x1 = x + node_matmul(xn0, w0_ref) + gather_sum(idx0_ref, f0_ref, e0) + b0
        # (dropout is identity in eval mode)

        # ---- sublayer 1: scalar-coupling-pair message passing, (folded) linear, residual ----
        xn1 = layernorm(x1, g1, be1)
        out_ref[...] = (x1 + node_matmul(xn1, w1_ref)
                        + gather_sum(idx1_ref, f1_ref, e1) + b1)

    return kernel


def prepare_params(params, mxu_dtype=jnp.bfloat16):
    """One-time parameter packing (hoisted out of the per-forward-call path).

    Folds Linear_t into the message weights:
        Linear_t(xn @ Wmess + A @ f) = xn @ (Wmess @ Wt^T) + A @ (f @ Wt^T) + bt
    so the kernel runs one node matmul + one gather einsum per sublayer.
    """
    D = params["W0"].shape[0]
    Dp = _round_up(D, LANE)
    pad_w = lambda w: jnp.pad(w, ((0, Dp - D), (0, Dp - D))).astype(mxu_dtype)
    w0p = pad_w(params["Wbm"] @ params["W0"].T)
    w1p = pad_w(params["Wsm"] @ params["W1"].T)
    # pack the six (1, D) vectors into one lane-dense (8, Dp) block
    # rows: g0, be0, b0, g1, be1, b1
    pvec = jnp.zeros((SUBLANE, Dp), jnp.float32)
    for i, name in enumerate(("g0", "be0", "b0", "g1", "be1", "b1")):
        pvec = pvec.at[i, :D].set(params[name].reshape(-1))
    return {"W0p": w0p, "W1p": w1p, "pvec": pvec,
            "W0T": params["W0"].T, "W1T": params["W1"].T, "D": D, "Dp": Dp}


def message_passing_layer(x, bond_x, bond_idx, angles, angles_idx, sc_x, sc_idx,
                          packed, *, mxu_dtype=jnp.bfloat16, target_m=256):
    """Fused forward pass of MessagePassingLayer (eval mode, fixed t)."""
    B, S, D = x.shape
    assert D == packed["D"]
    Dp = packed["Dp"]
    Nb, Na, Ns = bond_x.shape[1], angles.shape[1], sc_x.shape[1]

    Sp = _round_up(S, SUBLANE)
    # Edge dims only appear as full-extent block dims -> no 128-lane padding needed;
    # round to 16 for bf16 sublane packing only.
    E0 = _round_up(Nb + Na, 16)
    E1 = _round_up(Ns, 16)

    # ---- batch tile: feed the MXU with >= target_m flattened rows per block -------
    bt = min(B, max(1, pl.cdiv(target_m, Sp)))

    try:   # chip VMEM (v7x: 64 MiB, v5e/v6e: 128 MiB); keep 25% headroom.
        vmem_cap = getattr(pltpu.get_tpu_info(), "vmem_capacity_bytes", 0) or (64 << 20)
    except Exception:
        vmem_cap = 64 << 20
    vmem_budget = int(vmem_cap * 0.75)

    def footprint(b):
        blocks = 2 * b * (2 * Sp * Dp * 4              # x + out blocks (f32), double-buffered
                          + (E0 + E1) * Dp * 2         # folded edge features (bf16)
                          + (E0 + E1) * 4)             # int32 edge->node index maps
        weights = 2 * (2 * Dp * Dp * 2 + SUBLANE * Dp * 4)
        temps = b * Sp * ((E0 + E1) * 2 + 6 * Dp * 4)  # adj masks + f32 intermediates
        return blocks + weights + temps

    while bt > 1 and footprint(bt) > vmem_budget:
        bt -= 1
    grid_b = pl.cdiv(B, bt)
    bt = pl.cdiv(B, grid_b)          # rebalance so padded batch rows are minimal
    Bp = grid_b * bt

    # ---- wrapper-side layout plumbing (pad, fold, cast) ---------------------------
    def pad3(a, d1, d2, fill=0):
        return jnp.pad(a, ((0, Bp - a.shape[0]), (0, d1 - a.shape[1]),
                           (0, d2 - a.shape[2])), constant_values=fill)

    xp = pad3(x, Sp, Dp)

    f0 = jnp.concatenate([bond_x, angles], axis=1) @ packed["W0T"]   # fold Linear0
    f1 = sc_x @ packed["W1T"]                                        # fold Linear1
    f0 = pad3(f0, E0, Dp).astype(mxu_dtype)
    f1 = pad3(f1, E1, Dp).astype(mxu_dtype)

    # int32 edge->node maps; padded slots get -1 so they never match a node id.
    idx0 = jnp.concatenate([bond_idx, angles_idx], axis=1).astype(jnp.int32)[:, None, :]
    idx1 = sc_idx.astype(jnp.int32)[:, None, :]
    idx0 = pad3(idx0, 1, E0, fill=-1)
    idx1 = pad3(idx1, 1, E1, fill=-1)

    kernel = _make_kernel(D, Dp, bt, Sp, E0, E1)

    flops = grid_b * (4 * bt * Sp * Dp * Dp + 2 * bt * Sp * (E0 + E1) * Dp)
    transcendentals = 4 * Bp * Sp    # sqrt + approx reciprocal per LayerNorm row
    bytes_accessed = (xp.size * 4 + f0.size * 2 + f1.size * 2
                      + idx0.size * 4 + idx1.size * 4
                      + 2 * Dp * Dp * 2 + SUBLANE * Dp * 4
                      + Bp * Sp * Dp * 4)

    batched = lambda shape: pl.BlockSpec(shape, lambda b: (b, 0, 0))
    shared = lambda shape: pl.BlockSpec(shape, lambda b: (0, 0))
    # NOTE: the shared weight/param blocks never change block index; a single-buffer
    # pipeline_mode would save their second VMEM copy (~132 KiB here) but is left
    # off to stay on the vanilla, well-supported pipeline path.
    # NOTE: input_output_aliases={0: 0} (xp <-> out) is applicable when the caller
    # runs under jit with a donatable padded input; left off for op-by-op safety.

    out = pl.pallas_call(
        kernel,
        out_shape=jax.ShapeDtypeStruct((Bp, Sp, Dp), jnp.float32),
        grid_spec=pltpu.PrefetchScalarGridSpec(
            num_scalar_prefetch=0,
            grid=(grid_b,),
            in_specs=[
                batched((bt, Sp, Dp)),    # x (f32)
                batched((bt, 1, E0)),     # bond+angle edge->node ids (int32)
                batched((bt, E0, Dp)),    # folded bond+angle edge features (bf16)
                batched((bt, 1, E1)),     # sc-pair edge->node ids (int32)
                batched((bt, E1, Dp)),    # folded sc-pair edge features (bf16)
                shared((Dp, Dp)),         # W0' = Wbm @ W0^T (bf16)
                shared((Dp, Dp)),         # W1' = Wsm @ W1^T (bf16)
                shared((SUBLANE, Dp)),    # packed LN gains/biases + linear biases
            ],
            out_specs=pl.BlockSpec((bt, Sp, Dp), lambda b: (b, 0, 0)),
        ),
        compiler_params=pltpu.CompilerParams(
            dimension_semantics=("parallel",),
            vmem_limit_bytes=vmem_budget),
        cost_estimate=pl.CostEstimate(flops=flops,
                                      transcendentals=transcendentals,
                                      bytes_accessed=bytes_accessed),
    )(xp, idx0, f0, idx1, f1, packed["W0p"], packed["W1p"], packed["pvec"])

    return out[:B, :S, :D]


def reference(x, a_bond, bond_x, a_ang, angles, a_sc, sc_x, p):
    """Pure-JAX f32 reference of the same forward pass (unfolded)."""
    def ln(v, g, b):
        mean = jnp.mean(v, axis=-1, keepdims=True)
        var = jnp.sum((v - mean) ** 2, axis=-1, keepdims=True) / (v.shape[-1] - 1)
        return g * (v - mean) / (jnp.sqrt(var) + EPS) + b

    xn0 = ln(x, p["g0"], p["be0"])
    m0 = xn0 @ p["Wbm"] + a_bond @ bond_x + a_ang @ angles
    x1 = x + (m0 @ p["W0"].T + p["b0"])
    xn1 = ln(x1, p["g1"], p["be1"])
    m1 = xn1 @ p["Wsm"] + a_sc @ sc_x
    return x1 + (m1 @ p["W1"].T + p["b1"])


if __name__ == "__main__":
    B, S, D = 2, 8, 32          # batch, atoms, hidden size
    Nb, Na, Ns = 16, 16, 16     # bonds, angles, scalar-coupling pairs

    key = jax.random.PRNGKey(0)
    ks = jax.random.split(key, 16)

    x = jax.random.normal(ks[0], (B, S, D), jnp.float32)
    bond_x = jax.random.normal(ks[1], (B, Nb, D), jnp.float32)
    angles = jax.random.normal(ks[2], (B, Na, D), jnp.float32)
    sc_x = jax.random.normal(ks[3], (B, Ns, D), jnp.float32)

    # edge -> node index maps (bond_idx / angles_idx / sc_idx)
    bond_idx = jax.random.randint(ks[4], (B, Nb), 0, S)
    ang_idx = jax.random.randint(ks[5], (B, Na), 0, S)
    sc_idx = jax.random.randint(ks[6], (B, Ns), 0, S)

    scale = 1.0 / jnp.sqrt(jnp.float32(D))
    params = {
        "Wbm": jax.random.normal(ks[7], (D, D), jnp.float32) * scale,
        "Wsm": jax.random.normal(ks[8], (D, D), jnp.float32) * scale,
        "W0": jax.random.normal(ks[9], (D, D), jnp.float32) * scale,
        "b0": jax.random.normal(ks[10], (1, D), jnp.float32) * 0.1,
        "W1": jax.random.normal(ks[11], (D, D), jnp.float32) * scale,
        "b1": jax.random.normal(ks[12], (1, D), jnp.float32) * 0.1,
        "g0": jnp.ones((1, D), jnp.float32),
        "be0": jnp.zeros((1, D), jnp.float32),
        "g1": jnp.ones((1, D), jnp.float32),
        "be1": jnp.zeros((1, D), jnp.float32),
    }

    packed = prepare_params(params)   # one-time weight fold / pad / pack
    out = message_passing_layer(x, bond_x, bond_idx, angles, ang_idx,
                                sc_x, sc_idx, packed)
    out = jax.block_until_ready(out)

    # one-hot scatter matrices are only needed for the pure-JAX reference
    a_bond = jnp.transpose(jax.nn.one_hot(bond_idx, S, dtype=jnp.float32), (0, 2, 1))
    a_ang = jnp.transpose(jax.nn.one_hot(ang_idx, S, dtype=jnp.float32), (0, 2, 1))
    a_sc = jnp.transpose(jax.nn.one_hot(sc_idx, S, dtype=jnp.float32), (0, 2, 1))
    ref = reference(x, a_bond, bond_x, a_ang, angles, a_sc, sc_x, params)

    assert out.shape == (B, S, D)
    # Tolerance accounts for bf16 MXU operands (f32 accumulation), the weight fold,
    # and the approx reciprocal in LayerNorm.
    assert jnp.allclose(out, ref, atol=5e-2, rtol=5e-2), "mismatch vs JAX reference"

    print("KERNEL_OK")
</pallas_src>

<mosaic_0001>
module attributes {stable_mosaic.version = 11 : i64} {
  func.func @kernel(%arg0: i32, %arg1: memref<2x8x128xf32, #tpu.memory_space<vmem>>, %arg2: memref<2x1x32xi32, #tpu.memory_space<vmem>>, %arg3: memref<2x32x128xbf16, #tpu.memory_space<vmem>>, %arg4: memref<2x1x16xi32, #tpu.memory_space<vmem>>, %arg5: memref<2x16x128xbf16, #tpu.memory_space<vmem>>, %arg6: memref<128x128xbf16, #tpu.memory_space<vmem>>, %arg7: memref<128x128xbf16, #tpu.memory_space<vmem>>, %arg8: memref<8x128xf32, #tpu.memory_space<vmem>>, %arg9: memref<2x8x128xf32, #tpu.memory_space<vmem>>) attributes {dimension_semantics = [#tpu.dimension_semantics<parallel>], iteration_bounds = array<i64: 1>, scalar_prefetch = 0 : i64, scratch_operands = 0 : i64, tpu.core_type = #tpu.core_type<tc>, window_params = [{transform_indices = @transform_0, window_bounds = array<i64: 2, 8, 128>}, {transform_indices = @transform_1, window_bounds = array<i64: 2, 1, 32>}, {transform_indices = @transform_2, window_bounds = array<i64: 2, 32, 128>}, {transform_indices = @transform_3, window_bounds = array<i64: 2, 1, 16>}, {transform_indices = @transform_4, window_bounds = array<i64: 2, 16, 128>}, {pipeline_mode = #tpu.pipeline_mode<synchronous>, transform_indices = @transform_5, window_bounds = array<i64: 128, 128>}, {pipeline_mode = #tpu.pipeline_mode<synchronous>, transform_indices = @transform_6, window_bounds = array<i64: 128, 128>}, {pipeline_mode = #tpu.pipeline_mode<synchronous>, transform_indices = @transform_7, window_bounds = array<i64: 8, 128>}, {transform_indices = @transform_8, window_bounds = array<i64: 2, 8, 128>}]} {
    %c0 = arith.constant 0 : index
    %c0_0 = arith.constant 0 : index
    %c0_1 = arith.constant 0 : index
    %0 = vector.load %arg1[%c0, %c0_0, %c0_1] : memref<2x8x128xf32, #tpu.memory_space<vmem>>, vector<2x8x128xf32>
    %c0_2 = arith.constant 0 : index
    %c0_3 = arith.constant 0 : index
    %1 = vector.load %arg8[%c0_2, %c0_3] : memref<8x128xf32, #tpu.memory_space<vmem>>, vector<8x128xf32>
    %2 = vector.extract_strided_slice %1 {offsets = [0, 0], sizes = [1, 128], strides = [1, 1]} : vector<8x128xf32> to vector<1x128xf32>
    %3 = vector.extract_strided_slice %1 {offsets = [1, 0], sizes = [1, 128], strides = [1, 1]} : vector<8x128xf32> to vector<1x128xf32>
    %4 = vector.extract_strided_slice %1 {offsets = [2, 0], sizes = [1, 128], strides = [1, 1]} : vector<8x128xf32> to vector<1x128xf32>
    %5 = vector.extract_strided_slice %1 {offsets = [3, 0], sizes = [1, 128], strides = [1, 1]} : vector<8x128xf32> to vector<1x128xf32>
    %6 = vector.extract_strided_slice %1 {offsets = [4, 0], sizes = [1, 128], strides = [1, 1]} : vector<8x128xf32> to vector<1x128xf32>
    %7 = vector.extract_strided_slice %1 {offsets = [5, 0], sizes = [1, 128], strides = [1, 1]} : vector<8x128xf32> to vector<1x128xf32>
    %8 = tpu.iota {dimensions = array<i32: 2>} : vector<1x1x128xi32>
    %c32_i32 = arith.constant 32 : i32
    %9 = vector.broadcast %c32_i32 : i32 to vector<1x1x128xi32>
    %10 = arith.cmpi slt, %8, %9 : vector<1x1x128xi32>
    %cst = arith.constant dense<0.000000e+00> : vector<2x8xf32>
    %11 = vector.multi_reduction <add>, %0, %cst [2] : vector<2x8x128xf32> to vector<2x8xf32>
    %12 = vector.shape_cast %11 : vector<2x8xf32> to vector<2x8x1xf32>
    %cst_4 = arith.constant 3.125000e-02 : f32
    %13 = vector.broadcast %cst_4 : f32 to vector<2x8x1xf32>
    %14 = arith.mulf %12, %13 : vector<2x8x1xf32>
    %15 = vector.broadcast %14 : vector<2x8x1xf32> to vector<2x8x128xf32>
    %16 = arith.subf %0, %15 : vector<2x8x128xf32>
    %cst_5 = arith.constant 0.000000e+00 : f32
    %17 = vector.shape_cast %10 : vector<1x1x128xi1> to vector<1x1x128xi1>
    %18 = vector.broadcast %17 : vector<1x1x128xi1> to vector<2x8x128xi1>
    %19 = vector.broadcast %cst_5 : f32 to vector<2x8x128xf32>
    %20 = arith.select %18, %16, %19 : vector<2x8x128xi1>, vector<2x8x128xf32>
    %21 = arith.mulf %20, %20 : vector<2x8x128xf32>
    %cst_6 = arith.constant dense<0.000000e+00> : vector<2x8xf32>
    %22 = vector.multi_reduction <add>, %21, %cst_6 [2] : vector<2x8x128xf32> to vector<2x8xf32>
    %23 = vector.shape_cast %22 : vector<2x8xf32> to vector<2x8x1xf32>
    %cst_7 = arith.constant 0.0322580636 : f32
    %24 = vector.broadcast %cst_7 : f32 to vector<2x8x1xf32>
    %25 = arith.mulf %23, %24 : vector<2x8x1xf32>
    %26 = math.sqrt %25 : vector<2x8x1xf32>
    %cst_8 = arith.constant 9.99999997E-7 : f32
    %27 = vector.broadcast %cst_8 : f32 to vector<2x8x1xf32>
    %28 = arith.addf %26, %27 : vector<2x8x1xf32>
    %29 = tpu.reciprocal %28 {approx = true} : vector<2x8x1xf32> -> vector<2x8x1xf32>
    %30 = vector.shape_cast %2 : vector<1x128xf32> to vector<1x1x128xf32>
    %31 = vector.broadcast %30 : vector<1x1x128xf32> to vector<2x8x128xf32>
    %32 = arith.mulf %31, %20 : vector<2x8x128xf32>
    %33 = vector.broadcast %29 : vector<2x8x1xf32> to vector<2x8x128xf32>
    %34 = arith.mulf %32, %33 : vector<2x8x128xf32>
    %35 = vector.shape_cast %3 : vector<1x128xf32> to vector<1x1x128xf32>
    %36 = vector.broadcast %35 : vector<1x1x128xf32> to vector<2x8x128xf32>
    %37 = arith.addf %34, %36 : vector<2x8x128xf32>
    %38 = vector.shape_cast %37 : vector<2x8x128xf32> to vector<16x128xf32>
    %39 = arith.truncf %38 : vector<16x128xf32> to vector<16x128xbf16>
    %c0_9 = arith.constant 0 : index
    %c0_10 = arith.constant 0 : index
    %40 = vector.load %arg6[%c0_9, %c0_10] : memref<128x128xbf16, #tpu.memory_space<vmem>>, vector<128x128xbf16>
    %cst_11 = arith.constant dense<0.000000e+00> : vector<16x128xf32>
    %41 = tpu.matmul %39, %40, %cst_11 {dimension_numbers = #tpu.dot_dimension_numbers<[1], [0], [0], [1], [0, 0, 1, 1], [], []>} : vector<16x128xbf16>, vector<128x128xbf16>, vector<16x128xf32> -> vector<16x128xf32>
    %42 = vector.shape_cast %41 : vector<16x128xf32> to vector<2x8x128xf32>
    %43 = arith.addf %0, %42 : vector<2x8x128xf32>
    %44 = tpu.iota {dimensions = array<i32: 1>} : vector<2x8x32xi32>
    %c0_12 = arith.constant 0 : index
    %c0_13 = arith.constant 0 : index
    %c0_14 = arith.constant 0 : index
    %45 = vector.load %arg2[%c0_12, %c0_13, %c0_14] : memref<2x1x32xi32, #tpu.memory_space<vmem>>, vector<2x1x32xi32>
    %46 = vector.broadcast %45 : vector<2x1x32xi32> to vector<2x8x32xi32>
    %47 = arith.cmpi eq, %44, %46 : vector<2x8x32xi32>
    %48 = arith.extui %47 : vector<2x8x32xi1> to vector<2x8x32xi32>
    %49 = arith.sitofp %48 : vector<2x8x32xi32> to vector<2x8x32xf32>
    %50 = arith.truncf %49 : vector<2x8x32xf32> to vector<2x8x32xbf16>
    %c0_15 = arith.constant 0 : index
    %c0_16 = arith.constant 0 : index
    %c0_17 = arith.constant 0 : index
    %51 = vector.load %arg3[%c0_15, %c0_16, %c0_17] : memref<2x32x128xbf16, #tpu.memory_space<vmem>>, vector<2x32x128xbf16>
    "tpu.trace_start"() <{level = 10 : i32, message = "bse,bed->bsd"}> : () -> ()
    %cst_18 = arith.constant dense<0.000000e+00> : vector<2x8x128xf32>
    %52 = tpu.matmul %50, %51, %cst_18 {dimension_numbers = #tpu.dot_dimension_numbers<[2], [1], [1], [2], [0, 0, 0, 1, 1, 2], [0], [0]>} : vector<2x8x32xbf16>, vector<2x32x128xbf16>, vector<2x8x128xf32> -> vector<2x8x128xf32>
    "tpu.trace_stop"() : () -> ()
    %53 = arith.addf %43, %52 : vector<2x8x128xf32>
    %54 = vector.shape_cast %4 : vector<1x128xf32> to vector<1x1x128xf32>
    %55 = vector.broadcast %54 : vector<1x1x128xf32> to vector<2x8x128xf32>
    %56 = arith.addf %53, %55 : vector<2x8x128xf32>
    %cst_19 = arith.constant dense<0.000000e+00> : vector<2x8xf32>
    %57 = vector.multi_reduction <add>, %56, %cst_19 [2] : vector<2x8x128xf32> to vector<2x8xf32>
    %58 = vector.shape_cast %57 : vector<2x8xf32> to vector<2x8x1xf32>
    %cst_20 = arith.constant 3.125000e-02 : f32
    %59 = vector.broadcast %cst_20 : f32 to vector<2x8x1xf32>
    %60 = arith.mulf %58, %59 : vector<2x8x1xf32>
    %61 = vector.broadcast %60 : vector<2x8x1xf32> to vector<2x8x128xf32>
    %62 = arith.subf %56, %61 : vector<2x8x128xf32>
    %cst_21 = arith.constant 0.000000e+00 : f32
    %63 = vector.shape_cast %10 : vector<1x1x128xi1> to vector<1x1x128xi1>
    %64 = vector.broadcast %63 : vector<1x1x128xi1> to vector<2x8x128xi1>
    %65 = vector.broadcast %cst_21 : f32 to vector<2x8x128xf32>
    %66 = arith.select %64, %62, %65 : vector<2x8x128xi1>, vector<2x8x128xf32>
    %67 = arith.mulf %66, %66 : vector<2x8x128xf32>
    %cst_22 = arith.constant dense<0.000000e+00> : vector<2x8xf32>
    %68 = vector.multi_reduction <add>, %67, %cst_22 [2] : vector<2x8x128xf32> to vector<2x8xf32>
    %69 = vector.shape_cast %68 : vector<2x8xf32> to vector<2x8x1xf32>
    %cst_23 = arith.constant 0.0322580636 : f32
    %70 = vector.broadcast %cst_23 : f32 to vector<2x8x1xf32>
    %71 = arith.mulf %69, %70 : vector<2x8x1xf32>
    %72 = math.sqrt %71 : vector<2x8x1xf32>
    %cst_24 = arith.constant 9.99999997E-7 : f32
    %73 = vector.broadcast %cst_24 : f32 to vector<2x8x1xf32>
    %74 = arith.addf %72, %73 : vector<2x8x1xf32>
    %75 = tpu.reciprocal %74 {approx = true} : vector<2x8x1xf32> -> vector<2x8x1xf32>
    %76 = vector.shape_cast %5 : vector<1x128xf32> to vector<1x1x128xf32>
    %77 = vector.broadcast %76 : vector<1x1x128xf32> to vector<2x8x128xf32>
    %78 = arith.mulf %77, %66 : vector<2x8x128xf32>
    %79 = vector.broadcast %75 : vector<2x8x1xf32> to vector<2x8x128xf32>
    %80 = arith.mulf %78, %79 : vector<2x8x128xf32>
    %81 = vector.shape_cast %6 : vector<1x128xf32> to vector<1x1x128xf32>
    %82 = vector.broadcast %81 : vector<1x1x128xf32> to vector<2x8x128xf32>
    %83 = arith.addf %80, %82 : vector<2x8x128xf32>
    %84 = vector.shape_cast %83 : vector<2x8x128xf32> to vector<16x128xf32>
    %85 = arith.truncf %84 : vector<16x128xf32> to vector<16x128xbf16>
    %c0_25 = arith.constant 0 : index
    %c0_26 = arith.constant 0 : index
    %86 = vector.load %arg7[%c0_25, %c0_26] : memref<128x128xbf16, #tpu.memory_space<vmem>>, vector<128x128xbf16>
    %cst_27 = arith.constant dense<0.000000e+00> : vector<16x128xf32>
    %87 = tpu.matmul %85, %86, %cst_27 {dimension_numbers = #tpu.dot_dimension_numbers<[1], [0], [0], [1], [0, 0, 1, 1], [], []>} : vector<16x128xbf16>, vector<128x128xbf16>, vector<16x128xf32> -> vector<16x128xf32>
    %88 = vector.shape_cast %87 : vector<16x128xf32> to vector<2x8x128xf32>
    %89 = arith.addf %56, %88 : vector<2x8x128xf32>
    %90 = tpu.iota {dimensions = array<i32: 1>} : vector<2x8x16xi32>
    %c0_28 = arith.constant 0 : index
    %c0_29 = arith.constant 0 : index
    %c0_30 = arith.constant 0 : index
    %91 = vector.load %arg4[%c0_28, %c0_29, %c0_30] : memref<2x1x16xi32, #tpu.memory_space<vmem>>, vector<2x1x16xi32>
    %92 = vector.broadcast %91 : vector<2x1x16xi32> to vector<2x8x16xi32>
    %93 = arith.cmpi eq, %90, %92 : vector<2x8x16xi32>
    %94 = arith.extui %93 : vector<2x8x16xi1> to vector<2x8x16xi32>
    %95 = arith.sitofp %94 : vector<2x8x16xi32> to vector<2x8x16xf32>
    %96 = arith.truncf %95 : vector<2x8x16xf32> to vector<2x8x16xbf16>
    %c0_31 = arith.constant 0 : index
    %c0_32 = arith.constant 0 : index
    %c0_33 = arith.constant 0 : index
    %97 = vector.load %arg5[%c0_31, %c0_32, %c0_33] : memref<2x16x128xbf16, #tpu.memory_space<vmem>>, vector<2x16x128xbf16>
    "tpu.trace_start"() <{level = 10 : i32, message = "bse,bed->bsd"}> : () -> ()
    %cst_34 = arith.constant dense<0.000000e+00> : vector<2x8x128xf32>
    %98 = tpu.matmul %96, %97, %cst_34 {dimension_numbers = #tpu.dot_dimension_numbers<[2], [1], [1], [2], [0, 0, 0, 1, 1, 2], [0], [0]>} : vector<2x8x16xbf16>, vector<2x16x128xbf16>, vector<2x8x128xf32> -> vector<2x8x128xf32>
    "tpu.trace_stop"() : () -> ()
    %99 = arith.addf %89, %98 : vector<2x8x128xf32>
    %100 = vector.shape_cast %7 : vector<1x128xf32> to vector<1x1x128xf32>
    %101 = vector.broadcast %100 : vector<1x1x128xf32> to vector<2x8x128xf32>
    %102 = arith.addf %99, %101 : vector<2x8x128xf32>
    %c0_35 = arith.constant 0 : index
    %c0_36 = arith.constant 0 : index
    %c0_37 = arith.constant 0 : index
    %103 = vector.load %arg9[%c0_35, %c0_36, %c0_37] : memref<2x8x128xf32, #tpu.memory_space<vmem>>, vector<2x8x128xf32>
    tpu.vector_store %arg9[%c0_35, %c0_36, %c0_37], %102 {strides = array<i32>} : memref<2x8x128xf32, #tpu.memory_space<vmem>>, vector<2x8x128xf32>,
    return
  }
  func.func @transform_0(%arg0: i32) -> (i32, i32, i32) {
    %c0_i32 = arith.constant 0 : i32
    %c0_i32_0 = arith.constant 0 : i32
    %c0_i32_1 = arith.constant 0 : i32
    return %arg0, %c0_i32, %c0_i32_0 : i32, i32, i32
  }
  func.func @transform_1(%arg0: i32) -> (i32, i32, i32) {
    %c0_i32 = arith.constant 0 : i32
    %c0_i32_0 = arith.constant 0 : i32
    %c0_i32_1 = arith.constant 0 : i32
    return %arg0, %c0_i32, %c0_i32_0 : i32, i32, i32
  }
  func.func @transform_2(%arg0: i32) -> (i32, i32, i32) {
    %c0_i32 = arith.constant 0 : i32
    %c0_i32_0 = arith.constant 0 : i32
    %c0_i32_1 = arith.constant 0 : i32
    return %arg0, %c0_i32, %c0_i32_0 : i32, i32, i32
  }
  func.func @transform_3(%arg0: i32) -> (i32, i32, i32) {
    %c0_i32 = arith.constant 0 : i32
    %c0_i32_0 = arith.constant 0 : i32
    %c0_i32_1 = arith.constant 0 : i32
    return %arg0, %c0_i32, %c0_i32_0 : i32, i32, i32
  }
  func.func @transform_4(%arg0: i32) -> (i32, i32, i32) {
    %c0_i32 = arith.constant 0 : i32
    %c0_i32_0 = arith.constant 0 : i32
    %c0_i32_1 = arith.constant 0 : i32
    return %arg0, %c0_i32, %c0_i32_0 : i32, i32, i32
  }
  func.func @transform_5(%arg0: i32) -> (i32, i32) {
    %c0_i32 = arith.constant 0 : i32
    %c0_i32_0 = arith.constant 0 : i32
    %c0_i32_1 = arith.constant 0 : i32
    return %c0_i32, %c0_i32_0 : i32, i32
  }
  func.func @transform_6(%arg0: i32) -> (i32, i32) {
    %c0_i32 = arith.constant 0 : i32
    %c0_i32_0 = arith.constant 0 : i32
    %c0_i32_1 = arith.constant 0 : i32
    return %c0_i32, %c0_i32_0 : i32, i32
  }
  func.func @transform_7(%arg0: i32) -> (i32, i32) {
    %c0_i32 = arith.constant 0 : i32
    %c0_i32_0 = arith.constant 0 : i32
    %c0_i32_1 = arith.constant 0 : i32
    return %c0_i32, %c0_i32_0 : i32, i32
  }
  func.func @transform_8(%arg0: i32) -> (i32, i32, i32) {
    %c0_i32 = arith.constant 0 : i32
    %c0_i32_0 = arith.constant 0 : i32
    %c0_i32_1 = arith.constant 0 : i32
    return %arg0, %c0_i32, %c0_i32_0 : i32, i32, i32
  }
}

</mosaic_0001>

<bundles_post_ra>
// kernel: tpu_custom_call.1
= control target key start
LH: loop header
LB: loop body
LE: loop exit
PB: predicated region body
PF: predicated region fallthrough
CT: control target
= control target key end

     0   :  { %13 = vsyncpa [#allocation3], 0  ;;  %s1122_s0 = inlined_call_operand.hbm [shape: f32[2,8,128], index: 0, kind: input, shape index: {}]   ;;  %s1123_s1 = inlined_call_operand.hbm [shape: s32[2,1,32], index: 1, kind: input, shape index: {}]   ;;  %s1124_s2 = inlined_call_operand.hbm [shape: bf16[2,32,128], index: 2, kind: input, shape index: {}]   ;;  %s1125_s3 = inlined_call_operand.vmem [shape: s32[2,1,16], index: 3, kind: input, shape index: {}]   ;;  %s1126_s4 = inlined_call_operand.hbm [shape: bf16[2,16,128], index: 4, kind: input, shape index: {}]   ;;  %s1127_s5 = inlined_call_operand.hbm [shape: bf16[128,128], index: 5, kind: input, shape index: {}]   ;;  %s1128_s6 = inlined_call_operand.hbm [shape: bf16[128,128], index: 6, kind: input, shape index: {}]   ;;  %s1129_s7 = inlined_call_operand.hbm [shape: f32[8,128], index: 7, kind: input, shape index: {}]   ;;  %s1130_s8 = inlined_call_operand.hbm [shape: f32[2,8,128], index: 8, kind: output, shape index: {}]  }
   0x1   :  { %14 = vsyncpa [#allocation6], 0 }
   0x2   :  { %15 = vsyncpa [#allocation9], 0 }
   0x3   :  { %16 = vsyncpa [#allocation12], 0  ;;  %s35_s29 = sshll.u32 %s1123_s1, 4  ;;  %s36_s29 = int_to_ptr.hbm [resolvable:$true] %s35_s29 }
   0x4   :  { %17 = vsyncpa [#allocation4], 0  ;;  %s945_s30 = smov [#allocation5]   ;;  %s946_s10 = smov 16  }
   0x5   :  { %s37_s9 = sshll.u32 %s945_s30, 4  ;;  %s947_s11 = smov 1   ;;  %s38_s9 = int_to_ptr.vmem [resolvable:$true] %s37_s9 }
   0x6   :  { %43 = dma.hbm_to_vmem [thread:$0]  %s36_s29, 32, %s38_s9, [#allocation6], %s946_s10, %s946_s10, %s947_s11  }
   0x7   :  { %s63_s14 = sshll.u32 %s1126_s4, 4  ;;  %s948_s15 = smov [#allocation8]   ;;  %s64_s14 = int_to_ptr.hbm [resolvable:$true] %s63_s14 }
   0x8   :  { %s65_s16 = sshll.u32 %s948_s15, 4  ;;  %s89_s19 = sshll.u32 %s1128_s6, 4  ;;  %s66_s16 = int_to_ptr.vmem [resolvable:$true] %s65_s16  ;;  %s90_s19 = int_to_ptr.hbm [resolvable:$true] %s89_s19 }
   0x9   :  { %s949_s1 = smov 64   ;;  %s950_s20 = smov 4  }
   0xa   :  { %71 = dma.hbm_to_vmem [thread:$0]  %s64_s14, 256, %s66_s16, [#allocation9], %s949_s1, %s949_s1, %s950_s20  }
   0xb   :  { %s22_s23 = sshll.u32 %s1122_s0, 4  ;;  %s951_s4 = smov [#allocation11]   ;;  %s23_s23 = int_to_ptr.hbm [resolvable:$true] %s22_s23 }
   0xc   :  { %s91_s24 = sshll.u32 %s951_s4, 4  ;;  %s952_s6 = smov [#allocation2]   ;;  %s92_s24 = int_to_ptr.vmem [resolvable:$true] %s91_s24 }
   0xd   :  { %97 = dma.hbm_to_vmem [thread:$0]  %s90_s19, 1024, %s92_s24, [#allocation12], %s949_s1, %s949_s1, %s950_s20  }
   0xe   :  { %s24_s25 = sshll.u32 %s952_s6, 4  ;;  %s953_s26 = smov 128   ;;  %s25_s25 = int_to_ptr.vmem [resolvable:$true] %s24_s25 }
   0xf   :  { %s954_s27 = smov 8   ;;  %s48_s0 = sshll.u32 %s1124_s2, 4  ;;  %s49_s0 = int_to_ptr.hbm [resolvable:$true] %s48_s0 }
  0x10   :  { %30 = dma.hbm_to_vmem [thread:$0]  %s23_s23, 256, %s25_s25, [#allocation3], %s953_s26, %s953_s26, %s954_s27  }
  0x11   :  { %s955_s30 = smov [#allocation7]   ;;  %s76_s12 = sshll.u32 %s1127_s5, 4  ;;  %s77_s12 = int_to_ptr.hbm [resolvable:$true] %s76_s12 }
  0x12   :  { %s50_s9 = sshll.u32 %s955_s30, 4  ;;  %s956_s13 = smov [#allocation10]   ;;  %s51_s9 = int_to_ptr.vmem [resolvable:$true] %s50_s9 }
  0x13   :  { %56 = dma.hbm_to_vmem [thread:$0]  %s49_s0, 512, %s51_s9, [#allocation6], %s949_s1, %s949_s1, %s950_s20  }
  0x14   :  { %s78_s14 = sshll.u32 %s956_s13, 4  ;;  %s103_s17 = sshll.u32 %s1129_s7, 4  ;;  %s79_s14 = int_to_ptr.vmem [resolvable:$true] %s78_s14  ;;  %s104_s17 = int_to_ptr.hbm [resolvable:$true] %s103_s17 }
  0x15   :  { %84 = dma.hbm_to_vmem [thread:$0]  %s77_s12, 1024, %s79_s14, [#allocation9], %s949_s1, %s949_s1, %s950_s20  }
  0x16   :  { %s957_s2 = smov [#allocation13]  }
  0x17   :  { %s105_s18 = sshll.u32 %s957_s2, 4  ;;  %s106_s18 = int_to_ptr.vmem [resolvable:$true] %s105_s18 }
  0x18   :  { %108 = dma.hbm_to_vmem [thread:$0]  %s104_s17, 128, %s106_s18, [#allocation12]  }
  0x19   :  { %935 = dma.done.wait [#allocation3], 256  }
  0x1a   :  { %936 = vsyncadd [#allocation3], 4294967040 }
  0x1b   :  { %937 = dma.done.wait [#allocation6], 544  }
  0x1c   :  { %938 = vsyncadd [#allocation6], 4294966752 }
  0x1d   :  { %939 = dma.done.wait [#allocation9], 1280  }
  0x1e   :  { %940 = vsyncadd [#allocation9], 4294966016 }
  0x1f   :  { %941 = dma.done.wait [#allocation12], 1152  }
  0x20   :  { %942 = vsyncadd [#allocation12], 4294966144  ;;  %v1041_v0 = vld [vmem:[#allocation2] sm:$0xff]  ;;  %v1044_v1 = vld [vmem:[#allocation2 + $0x8] sm:$0xff]  ;;  %v141_v2 = vlaneseq  ;;  %v958_v25 = vmov 0.0   ;;  %vm315_vm3 = vcmask 261120  }
  0x21   :  { %144 = vadd.xlane.f32.xlu0 %v1041_v0  ;;  %v693_v14 = vld [vmem:[#allocation10 + $0x38] sm:$0xff]  ;;  %v692_v15 = vld [vmem:[#allocation10 + $0x30] sm:$0xff]  ;;  %v691_v18 = vld [vmem:[#allocation10 + $0x28] sm:$0xff]  ;;  %vm522_vm9 = vcmask 130048   ;;  %s574_s23 = sshll.u32 %s1130_s8, 4  ;;  %s575_s23 = int_to_ptr.hbm [resolvable:$true] %s574_s23 }
  0x22   :  { %v1047_v3 = vand.u32 127, %v141_v2  ;;  %265 = vmatpush.bf16.msra.mxu0 %v693_v14  ;;  %v1064_v16 = vshrl.u32 %v141_v2, 7  ;;  %v695_v17 = vld [vmem:[#allocation7 + $0x8] sm:$0xff]  ;;  %v697_v19 = vld [vmem:[#allocation7 + $0x18] sm:$0xff]  ;;  %v694_v20 = vld [vmem:[#allocation7] sm:$0xff] }
  0x23   :  { %325 = vmatpush.bf16.msra.mxu1 %v695_v17  ;;  %v723_v21 = vld [vmem:[#allocation5] ss:$0 sm:$0xff]  ;;  %v724_v22 = vld [vmem:[#allocation5 + $0x1] ss:$0 sm:$0xff]  ;;  %353 = vmatpush.bf16.msra.mxu2 %v697_v19  ;;  %v696_v23 = vld [vmem:[#allocation7 + $0x10] sm:$0xff] }
  0x24   :  { %vm143_vm0 = vcmp.lt.s32.totalorder %v1047_v3, 32  ;;  %vm287_vm1 = vcmp.eq.s32.totalorder %v1064_v16, %v723_v21  ;;  %vm288_vm2 = vcmp.eq.s32.totalorder %v1064_v16, %v724_v22  ;;  %v690_v24 = vld [vmem:[#allocation10 + $0x20] sm:$0xff]  ;;  %v689_v30 = vld [vmem:[#allocation10 + $0x18] sm:$0xff]  ;;  %v688_v32 = vld [vmem:[#allocation10 + $0x10] sm:$0xff] }
  0x25   :  { %v622_v26 = vsel %vm287_vm1, 1.0, %v958_v25  ;;  %v623_v27 = vsel %vm288_vm2, 1.0, %v958_v25  ;;  %v687_v34 = vld [vmem:[#allocation10 + $0x8] sm:$0xff]  ;;  %v686_v36 = vld [vmem:[#allocation10] sm:$0xff] }
  0x26   :  { %266 = vmatpush.bf16.msra.mxu0 %v692_v15  ;;  %v293_v28 = vpack.c.bf16 %v622_v26, %v622_v26  ;;  %v294_v29 = vpack.c.bf16 %v623_v27, %v623_v27  ;;  %v1070_v57 = vld [vmem:[#allocation13] sm:$0xff] }
  0x27   :  { %326 = vmatpush.bf16.msra.mxu1 %v694_v20  ;;  %354 = vmatpush.bf16.msra.mxu2 %v696_v23  ;;  %v192_v61 = vperm.slane %v1070_v57, 0 }
  0x29   :  { %146 = vadd.xlane.f32.xlu0 %v1044_v1 }
  0x2a   :  { %267 = vmatpush.bf16.msra.mxu0 %v691_v18  ;;  %632 = vmatmul.msk.bf16.vlgmr.msra.gmra.mxu1 %vm315_vm3, %v293_v28 }
  0x2b   :  { %641 = vmatmul.msk.bf16.vlgmr.msra.gmra.mxu2 %vm315_vm3, %v294_v29 }
  0x2e   :  { %268 = vmatpush.bf16.msra.mxu0 %v690_v24 }
  0x32   :  { %269 = vmatpush.bf16.msra.mxu0 %v689_v30 }
  0x36   :  { %270 = vmatpush.bf16.msra.mxu0 %v688_v32 }
  0x3a   :  { %271 = vmatpush.bf16.msra.mxu0 %v687_v34  ;;  %v705_v34 = vld [vmem:[#allocation11 + $0x38] sm:$0xff] }
  0x3b   :  { %484 = vmatpush.bf16.msra.mxu3 %v705_v34 }
  0x3e   :  { %272 = vmatpush.bf16.msra.mxu0 %v686_v36  ;;  %v707_v36 = vld [vmem:[#allocation8 + $0x8] sm:$0xff] }
  0x3f   :  { %555 = vmatpush.bf16.msrb.mxu2 %v707_v36 }
  0x94   :  { %v145_v4 = vpop.xlane.xlu0 %144 }
  0x95   :  { %v148_v5 = vmul.f32 0.03125, %v145_v4 }
  0x97   :  { %v150_v6 = vsub.f32 %v1041_v0, %v148_v5  ;;  %v197_v5 = vperm.slane %v1070_v57, 1 }
  0x99   :  { %v1053_v7 = vsel %vm143_vm0, %v150_v6, 0.0 }
  0x9a   :  { %v156_v8 = vmul.f32 %v1053_v7, %v1053_v7  ;;  %v193_v63 = vmul.f32 %v192_v61, %v1053_v7  ;;  %v362_v7 = vperm.slane %v1070_v57, 2 }
  0x9c   :  { %158 = vadd.xlane.f32.xlu1 %v156_v8  ;;  %v147_v9 = vpop.xlane.xlu0 %146 }
  0x9d   :  { %v149_v10 = vmul.f32 0.03125, %v147_v9 }
  0x9f   :  { %v151_v11 = vsub.f32 %v1044_v1, %v149_v10 }
  0xa1   :  { %v1060_v12 = vsel %vm143_vm0, %v151_v11, 0.0 }
  0xa2   :  { %v157_v13 = vmul.f32 %v1060_v12, %v1060_v12  ;;  %v194_v2 = vmul.f32 %v192_v61, %v1060_v12 }
  0xa4   :  { %160 = vadd.xlane.f32.xlu1 %v157_v13 }
  0xa7   :  { %v328_v13 = vpop.f32.mrf.mxu1 }
  0xae   :  { %v356_v15 = vpop.f32.mrf.mxu2 }
  0xaf   :  { %v330_v14 = vpop.f32.mrf.mxu1 }
  0xb6   :  { %v358_v17 = vpop.f32.mrf.mxu2 }
 0x10f   :  { %v159_v31 = vpop.xlane.xlu1 %158 }
 0x110   :  { %v162_v33 = vmul.f32 0.032258064, %v159_v31 }
 0x112   :  { %727 = vrsqrt.f32 %v162_v33  ;;  %vm171_vm4 = vcmp.eq.f32.partialorder %v162_v33, inf  ;;  %v174_v48 = vand.u32 2147483648, %v162_v33  ;;  %vm173_vm5 = vcmp.eq.f32.partialorder %v162_v33, 0.0 }
 0x117   :  { %v161_v35 = vpop.xlane.xlu1 %160 }
 0x118   :  { %v728_v37 = vpop.eup %727  ;;  %v163_v38 = vmul.f32 0.032258064, %v161_v35  ;;  %v704_v35 = vld [vmem:[#allocation11 + $0x30] sm:$0xff] }
 0x119   :  { %v165_v39 = vmul.f32 %v728_v37, %v162_v33  ;;  %485 = vmatpush.bf16.msra.mxu3 %v704_v35 }
 0x11a   :  { %729 = vrsqrt.f32 %v163_v38  ;;  %vm183_vm6 = vcmp.eq.f32.partialorder %v163_v38, inf  ;;  %v186_v56 = vand.u32 2147483648, %v163_v38  ;;  %vm185_vm7 = vcmp.eq.f32.partialorder %v163_v38, 0.0 }
 0x11b   :  { %v166_v40 = vmul.f32 %v728_v37, %v165_v39  ;;  %v702_v39 = vld [vmem:[#allocation11 + $0x20] sm:$0xff] }
 0x11d   :  { %v167_v41 = vmul.f32 0.5, %v166_v40  ;;  %v701_v40 = vld [vmem:[#allocation11 + $0x18] sm:$0xff] }
 0x11f   :  { %v168_v42 = vsub.f32 1.5, %v167_v41  ;;  %v700_v41 = vld [vmem:[#allocation11 + $0x10] sm:$0xff] }
 0x120   :  { %v730_v43 = vpop.eup %729 }
 0x121   :  { %v177_v44 = vmul.f32 %v730_v43, %v163_v38  ;;  %v169_v45 = vmul.f32 %v728_v37, %v168_v42  ;;  %v703_v37 = vld [vmem:[#allocation11 + $0x28] sm:$0xff] }
 0x122   :  { %486 = vmatpush.bf16.msra.mxu3 %v703_v37 }
 0x123   :  { %v170_v46 = vmul.f32 %v169_v45, %v162_v33  ;;  %v178_v47 = vmul.f32 %v730_v43, %v177_v44  ;;  %v698_v45 = vld [vmem:[#allocation11] sm:$0xff] }
 0x125   :  { %v172_v49 = vsel %vm171_vm4, %v162_v33, %v170_v46  ;;  %v179_v50 = vmul.f32 0.5, %v178_v47 }
 0x126   :  { %v175_v51 = vsel %vm173_vm5, %v174_v48, %v172_v49  ;;  %487 = vmatpush.bf16.msra.mxu3 %v702_v39  ;;  %v725_v48 = vld [vmem:[%s1125_s3 + $0x1] ss:$0 sm:$0xff] }
 0x127   :  { %v180_v52 = vsub.f32 1.5, %v179_v50  ;;  %v188_v54 = vadd.f32 1e-06, %v175_v51  ;;  %vm505_vm8 = vcmp.eq.s32.totalorder %v1064_v16, %v725_v48 }
 0x128   :  { %v675_v51 = vsel %vm505_vm8, 1.0, %v958_v25 }
 0x129   :  { %v181_v53 = vmul.f32 %v730_v43, %v180_v52  ;;  %731 = vrcp.f32 %v188_v54  ;;  %v699_v43 = vld [vmem:[#allocation11 + $0x8] sm:$0xff]  ;;  %v726_v54 = vld [vmem:[%s1125_s3] ss:$0 sm:$0xff]  ;;  %s959_s3 = smov [#allocation14]  }
 0x12a   :  { %488 = vmatpush.bf16.msra.mxu3 %v701_v40  ;;  %vm504_vm10 = vcmp.eq.s32.totalorder %v1064_v16, %v726_v54  ;;  %s572_s20 = sshll.u32 %s959_s3, 4  ;;  %s573_s20 = int_to_ptr.vmem [resolvable:$true] %s572_s20 }
 0x12b   :  { %v182_v55 = vmul.f32 %v181_v53, %v163_v38  ;;  %v511_v53 = vpack.c.bf16 %v675_v51, %v675_v51 }
 0x12d   :  { %v184_v58 = vsel %vm183_vm6, %v163_v38, %v182_v55  ;;  %v706_v38 = vld [vmem:[#allocation8] sm:$0xff]  ;;  %685 = vmatmul.msk.bf16.vlgmr.msrb.gmra.mxu2 %vm522_vm9, %v511_v53 }
 0x12e   :  { %v187_v59 = vsel %vm185_vm7, %v186_v56, %v184_v58  ;;  %533 = vmatpush.bf16.msrb.mxu1 %v706_v38  ;;  %489 = vmatpush.bf16.msra.mxu3 %v700_v41 }
 0x12f   :  { %v189_v60 = vadd.f32 1e-06, %v187_v59  ;;  %v732_v62 = vpop.eup %731 }
 0x130   :  { %v195_v4 = vmul.f32 %v732_v62, %v193_v63 }
 0x131   :  { %733 = vrcp.f32 %v189_v60  ;;  %v674_v60 = vsel %vm504_vm10, 1.0, %v958_v25 }
 0x132   :  { %v198_v9 = vadd.f32 %v197_v5, %v195_v4  ;;  %490 = vmatpush.bf16.msra.mxu3 %v699_v43  ;;  %v510_v61 = vpack.c.bf16 %v674_v60, %v674_v60 }
 0x134   :  { %680 = vmatmul.msk.bf16.vlgmr.msrb.gmra.mxu1 %vm522_vm9, %v510_v61 }
 0x136   :  { %491 = vmatpush.bf16.msra.mxu3 %v698_v45 }
 0x137   :  { %v734_v6 = vpop.eup %733 }
 0x138   :  { %v196_v8 = vmul.f32 %v734_v6, %v194_v2 }
 0x13a   :  { %v199_v10 = vadd.f32 %v197_v5, %v196_v8 }
 0x13c   :  { %v200_v11 = vpack.c.bf16 %v199_v10, %v198_v9 }
 0x13e   :  { %273 = vmatmul.bf16.vlgmr.msra.gmra.mxu0 %v200_v11 }
 0x1bb   :  { %v274_v18 = vpop.f32.mrf.mxu0 }
 0x1bc   :  { %v279_v19 = vadd.f32 %v274_v18, %v1041_v0 }
 0x1be   :  { %v360_v20 = vadd.f32 %v328_v13, %v279_v19 }
 0x1c0   :  { %v1078_v12 = vadd.f32 %v362_v7, %v360_v20  ;;  %v416_v20 = vperm.slane %v1070_v57, 4 }
 0x1c2   :  { %365 = vadd.xlane.f32.xlu2 %v1078_v12 }
 0x1c3   :  { %v276_v21 = vpop.f32.mrf.mxu0 }
 0x1c4   :  { %v280_v22 = vadd.f32 %v276_v21, %v1044_v1 }
 0x1c6   :  { %v361_v23 = vadd.f32 %v356_v15, %v280_v22  ;;  %v411_v15 = vperm.slane %v1070_v57, 3 }
 0x1c8   :  { %v1082_v24 = vadd.f32 %v362_v7, %v361_v23 }
 0x1ca   :  { %367 = vadd.xlane.f32.xlu2 %v1082_v24 }
 0x235   :  { %v366_v26 = vpop.xlane.xlu2 %365 }
 0x236   :  { %v369_v27 = vmul.f32 0.03125, %v366_v26 }
 0x238   :  { %v371_v28 = vsub.f32 %v1078_v12, %v369_v27 }
 0x23a   :  { %v1088_v0 = vsel %vm143_vm0, %v371_v28, 0.0  ;;  %v535_v28 = vpop.f32.mrf.mxu1 }
 0x23b   :  { %v375_v29 = vmul.f32 %v1088_v0, %v1088_v0  ;;  %v412_v18 = vmul.f32 %v411_v15, %v1088_v0  ;;  %v563_v0 = vperm.slane %v1070_v57, 5 }
 0x23d   :  { %377 = vadd.xlane.f32.xlu0 %v375_v29  ;;  %v368_v30 = vpop.xlane.xlu2 %367  ;;  %v557_v29 = vpop.f32.mrf.mxu2 }
 0x23e   :  { %v370_v31 = vmul.f32 0.03125, %v368_v30 }
 0x240   :  { %v372_v1 = vsub.f32 %v1082_v24, %v370_v31 }
 0x242   :  { %v1095_v32 = vsel %vm143_vm0, %v372_v1, 0.0  ;;  %v537_v30 = vpop.f32.mrf.mxu1 }
 0x243   :  { %v376_v33 = vmul.f32 %v1095_v32, %v1095_v32  ;;  %v413_v19 = vmul.f32 %v411_v15, %v1095_v32 }
 0x245   :  { %379 = vadd.xlane.f32.xlu1 %v376_v33  ;;  %v559_v31 = vpop.f32.mrf.mxu2 }
 0x2b0   :  { %v378_v3 = vpop.xlane.xlu0 %377 }
 0x2b1   :  { %v381_v42 = vmul.f32 0.032258064, %v378_v3 }
 0x2b3   :  { %735 = vrsqrt.f32 %v381_v42  ;;  %vm390_vm11 = vcmp.eq.f32.partialorder %v381_v42, inf  ;;  %v393_v2 = vand.u32 2147483648, %v381_v42  ;;  %vm392_vm12 = vcmp.eq.f32.partialorder %v381_v42, 0.0 }
 0x2b8   :  { %v380_v44 = vpop.xlane.xlu1 %379 }
 0x2b9   :  { %v736_v46 = vpop.eup %735  ;;  %v382_v47 = vmul.f32 0.032258064, %v380_v44 }
 0x2ba   :  { %v384_v49 = vmul.f32 %v736_v46, %v381_v42 }
 0x2bb   :  { %737 = vrsqrt.f32 %v382_v47  ;;  %vm402_vm13 = vcmp.eq.f32.partialorder %v382_v47, inf  ;;  %v405_v16 = vand.u32 2147483648, %v382_v47  ;;  %vm404_vm14 = vcmp.eq.f32.partialorder %v382_v47, 0.0 }
 0x2bc   :  { %v385_v50 = vmul.f32 %v736_v46, %v384_v49 }
 0x2be   :  { %v386_v52 = vmul.f32 0.5, %v385_v50 }
 0x2c0   :  { %v387_v55 = vsub.f32 1.5, %v386_v52 }
 0x2c1   :  { %v738_v56 = vpop.eup %737 }
 0x2c2   :  { %v396_v58 = vmul.f32 %v738_v56, %v382_v47  ;;  %v388_v59 = vmul.f32 %v736_v46, %v387_v55 }
 0x2c4   :  { %v389_v62 = vmul.f32 %v388_v59, %v381_v42  ;;  %v397_v63 = vmul.f32 %v738_v56, %v396_v58 }
 0x2c6   :  { %v391_v4 = vsel %vm390_vm11, %v381_v42, %v389_v62  ;;  %v398_v5 = vmul.f32 0.5, %v397_v63 }
 0x2c7   :  { %v394_v6 = vsel %vm392_vm12, %v393_v2, %v391_v4 }
 0x2c8   :  { %v399_v8 = vsub.f32 1.5, %v398_v5  ;;  %v407_v10 = vadd.f32 1e-06, %v394_v6 }
 0x2ca   :  { %v400_v9 = vmul.f32 %v738_v56, %v399_v8  ;;  %739 = vrcp.f32 %v407_v10 }
 0x2cc   :  { %v401_v11 = vmul.f32 %v400_v9, %v382_v47 }
 0x2ce   :  { %v403_v13 = vsel %vm402_vm13, %v382_v47, %v401_v11 }
 0x2cf   :  { %v406_v25 = vsel %vm404_vm14, %v405_v16, %v403_v13 }
 0x2d0   :  { %v408_v14 = vadd.f32 1e-06, %v406_v25  ;;  %v740_v17 = vpop.eup %739 }
 0x2d1   :  { %v414_v7 = vmul.f32 %v740_v17, %v412_v18 }
 0x2d2   :  { %741 = vrcp.f32 %v408_v14 }
 0x2d3   :  { %v417_v23 = vadd.f32 %v416_v20, %v414_v7 }
 0x2d8   :  { %v742_v21 = vpop.eup %741 }
 0x2d9   :  { %v415_v22 = vmul.f32 %v742_v21, %v413_v19 }
 0x2db   :  { %v418_v26 = vadd.f32 %v416_v20, %v415_v22 }
 0x2dd   :  { %v419_v27 = vpack.c.bf16 %v418_v26, %v417_v23 }
 0x2df   :  { %492 = vmatmul.bf16.vlgmr.msra.gmra.mxu3 %v419_v27 }
 0x362   :  { %v493_v1 = vpop.f32.mrf.mxu3 }
 0x363   :  { %v498_v33 = vadd.f32 %v493_v1, %v1078_v12 }
 0x365   :  { %v561_v34 = vadd.f32 %v535_v28, %v498_v33 }
 0x367   :  { %v564_v32 = vadd.f32 %v563_v0, %v561_v34 }
 0x369   :  { %566 = vst [vmem:[#allocation14] sm:$0xff] %v564_v32 }
 0x36a   :  { %v495_v35 = vpop.f32.mrf.mxu3 }
 0x36b   :  { %v499_v36 = vadd.f32 %v495_v35, %v1082_v24 }
 0x36d   :  { %v562_v37 = vadd.f32 %v557_v29, %v499_v36 }
 0x36f   :  { %v565_v38 = vadd.f32 %v563_v0, %v562_v37 }
 0x371   :  { %567 = vst [vmem:[#allocation14 + $0x8] sm:$0xff] %v565_v38 }
 0x372   :  { %580 = dma.vmem_to_hbm [thread:$0]  %s573_s20, 256, %s575_s23, [#allocation4], %s953_s26, %s953_s26, %s954_s27  }
 0x373   :  { %943 = dma.done.wait [#allocation4], 256  }
 0x374   :  { %944 = vsyncadd [#allocation4], 4294967040 }
 0x375   :  { %585 = vsyncpa [#allocation3], 1 }
 0x376   :  { %586 = vsyncpa [#allocation6], 1 }
 0x377   :  { %587 = vsyncpa [#allocation9], 1 }
 0x378   :  { %588 = vsyncpa [#allocation12], 1 }
 0x379   :  { %589 = vsyncpa [#allocation4], 1 }

</bundles_post_ra>
